<compile_context>
chip_gen: v6e
topology: v6e:2x2x1
jax: 0.10.0
libtpu: 0.0.40
codegen_flags: <defaults>
</compile_context>

<pallas_src>
import jax
import jax.numpy as jnp
from jax.experimental import pallas as pl
from jax.experimental.pallas import tpu as pltpu

_LANES = 128  # vreg fast (lane) axis


def _device_kind():
    try:
        return jax.devices()[0].device_kind.lower()
    except Exception:  # pragma: no cover - defensive; default to conservative
        return ""


_KIND = _device_kind()
if "v7" in _KIND:
    _BIG_TILE_ROWS = 4096      # 2 MiB/tile; 4 buffers = 8 MiB << 32 MiB scoped
    _KERNEL_MIN_N = 1 << 20    # ~1M f32 (~4 MB) before the kernel path pays off
elif "v6" in _KIND:
    _BIG_TILE_ROWS = 2048      # 1 MiB/tile
    _KERNEL_MIN_N = 1 << 19
else:
    _BIG_TILE_ROWS = 1024      # 512 KiB/tile; safe for v5e's 16 MiB scoped VMEM
    _KERNEL_MIN_N = 1 << 19


def _pick_tile_rows(rows):
    """Choose rows-per-block for a (rows, 128) f32 slab."""
    if rows >= 2 * _BIG_TILE_ROWS:
        return _BIG_TILE_ROWS
    # Small/medium inputs: split into (at least) 2 blocks so the "parallel"
    # row axis shards across both TensorCores on v7x and the pipeline still
    # overlaps DMA with compute; keep the 8-row sublane granule.
    half = pl.cdiv(rows, 2)
    return max(8, ((half + 7) // 8) * 8)


def _linreg_kernel(w_ref, b_ref, x_ref, o_ref):
    # w_ref, b_ref: (1,) SMEM scalars; x_ref, o_ref: (tile_rows, 128) VMEM.
    # Scalar * vector FMA stays on the VPU; w/b ride the scalar path.
    o_ref[...] = x_ref[...] * w_ref[0] + b_ref[0]


def _linreg_pallas(x_slab, weight, bias, *, donate_x=False):
    """y = w * x + b on a lane-dense (rows, 128) slab."""
    rows = x_slab.shape[0]
    tile_rows = _pick_tile_rows(rows)
    grid = (pl.cdiv(rows, tile_rows),)

    w_s = weight.reshape(1).astype(x_slab.dtype)
    b_s = bias.reshape(1).astype(x_slab.dtype)

    itemsize = jnp.dtype(x_slab.dtype).itemsize
    extra = {}
    if donate_x:
        # Halves HBM footprint when the caller can donate x (no traffic win).
        extra["input_output_aliases"] = {2: 0}

    return pl.pallas_call(
        _linreg_kernel,
        out_shape=jax.ShapeDtypeStruct((rows, _LANES), x_slab.dtype),
        grid=grid,
        in_specs=[
            pl.BlockSpec(memory_space=pltpu.MemorySpace.SMEM),    # weight (1,)
            pl.BlockSpec(memory_space=pltpu.MemorySpace.SMEM),    # bias (1,)
            pl.BlockSpec((tile_rows, _LANES), lambda i: (i, 0)),  # x tile
        ],
        out_specs=pl.BlockSpec((tile_rows, _LANES), lambda i: (i, 0)),
        compiler_params=pltpu.CompilerParams(
            # Row axis is independent: shard across the 2 TCs on v7x
            # (no-op on single-core v5e/v6e).
            dimension_semantics=("parallel",),
        ),
        cost_estimate=pl.CostEstimate(
            flops=2 * rows * _LANES,
            transcendentals=0,
            bytes_accessed=2 * rows * _LANES * itemsize,
        ),
        **extra,
    )(w_s, b_s, x_slab)


def linear_regression_forward(x, weight, bias, *, use_kernel=None,
                              donate_x=False):
    """Forward of nn.Linear(1, 1): y = x @ W^T + b.

    Args:
      x:      [N, 1] float32
      weight: [1, 1] float32  (out_features, in_features)
      bias:   [1]    float32
      use_kernel: force (True) / skip (False) the Pallas path; default picks
        the kernel only for large N where HBM bandwidth is the limiter.
      donate_x: alias the x slab to the output inside the kernel (only safe if
        the caller no longer needs x).
    Returns:
      [N, 1] float32

    Call under jax.jit so the (free) reshapes and the tiny ragged-tail math
    fuse around the pallas_call instead of dispatching as separate ops.
    """
    n = x.shape[0]
    if use_kernel is None:
        use_kernel = n >= _KERNEL_MIN_N

    x_flat = x.reshape(-1)                 # bitcast view, free
    w_sc = weight.reshape(())
    b_sc = bias.reshape(())

    n_main = (n // _LANES) * _LANES        # lane-aligned prefix
    if (not use_kernel) or n_main == 0:
        # Tiny / ragged-only N: 2*N flops — fused jnp beats kernel launch.
        return (x_flat * w_sc + b_sc).reshape(n, 1)

    rows = n_main // _LANES
    x_slab = x_flat[:n_main].reshape(rows, _LANES)   # free view when n aligned
    y_main = _linreg_pallas(x_slab, weight, bias, donate_x=donate_x)
    y_main = y_main.reshape(n_main, 1)               # free bitcast view

    if n_main == n:
        return y_main

    # Ragged tail (< 128 elements): plain jnp, then a single small concat.
    tail = (x_flat[n_main:] * w_sc + b_sc).reshape(n - n_main, 1)
    return jnp.concatenate([y_main, tail], axis=0)


if __name__ == "__main__":
    key = jax.random.PRNGKey(0)
    kx, kw, kb = jax.random.split(key, 3)

    # Deterministic parameter init mimicking PyTorch's U(-1/sqrt(fan_in), ...)
    # with fan_in = 1  =>  U(-1, 1).
    weight = jax.random.uniform(kw, (1, 1), minval=-1.0, maxval=1.0,
                                dtype=jnp.float32)
    bias = jax.random.uniform(kb, (1,), minval=-1.0, maxval=1.0,
                              dtype=jnp.float32)

    # Jit so reshapes / tail math fuse around the pallas_call; force the
    # kernel path at these small N so the kernel is actually exercised.
    fwd_kernel = jax.jit(
        lambda x, w, b: linear_regression_forward(x, w, b, use_kernel=True))

    ok = True
    # n=1024: lane-aligned, pure kernel path.  n=1000: kernel prefix + jnp tail.
    for n in (1024, 1000):
        x = jax.random.normal(kx, (n, 1), dtype=jnp.float32)
        out = jax.block_until_ready(fwd_kernel(x, weight, bias))
        ref = x @ weight.T + bias
        ok &= out.shape == (n, 1)
        ok &= bool(jnp.allclose(out, ref, atol=1e-6, rtol=1e-6))

    # Tiny N: default dispatcher takes the fused jnp path (no kernel launch).
    x_small = jax.random.normal(kx, (8, 1), dtype=jnp.float32)
    out_small = jax.block_until_ready(
        linear_regression_forward(x_small, weight, bias))
    ok &= out_small.shape == (8, 1)
    ok &= bool(jnp.allclose(out_small, x_small @ weight.T + bias,
                            atol=1e-6, rtol=1e-6))

    assert ok
    print("KERNEL_OK")
</pallas_src>

<mosaic_0001>
module attributes {stable_mosaic.version = 11 : i64} {
  func.func @_linreg_kernel(%arg0: i32, %arg1: memref<1xf32, #tpu.memory_space<smem>>, %arg2: memref<1xf32, #tpu.memory_space<smem>>, %arg3: memref<8x128xf32, #tpu.memory_space<vmem>>, %arg4: memref<8x128xf32, #tpu.memory_space<vmem>>) attributes {dimension_semantics = [#tpu.dimension_semantics<parallel>], iteration_bounds = array<i64: 1>, scalar_prefetch = 0 : i64, scratch_operands = 0 : i64, tpu.core_type = #tpu.core_type<tc>, window_params = [{transform_indices = @transform_0, window_bounds = array<i64: 1>}, {transform_indices = @transform_1, window_bounds = array<i64: 1>}, {transform_indices = @transform_2, window_bounds = array<i64: 8, 128>}, {transform_indices = @transform_3, window_bounds = array<i64: 8, 128>}]} {
    %c0 = arith.constant 0 : index
    %c0_0 = arith.constant 0 : index
    %0 = vector.load %arg3[%c0, %c0_0] : memref<8x128xf32, #tpu.memory_space<vmem>>, vector<8x128xf32>
    %c0_1 = arith.constant 0 : index
    %1 = memref.load %arg1[%c0_1] : memref<1xf32, #tpu.memory_space<smem>>
    %2 = vector.broadcast %1 : f32 to vector<8x128xf32>
    %3 = arith.mulf %0, %2 : vector<8x128xf32>
    %c0_2 = arith.constant 0 : index
    %4 = memref.load %arg2[%c0_2] : memref<1xf32, #tpu.memory_space<smem>>
    %5 = vector.broadcast %4 : f32 to vector<8x128xf32>
    %6 = arith.addf %3, %5 : vector<8x128xf32>
    %c0_3 = arith.constant 0 : index
    %c0_4 = arith.constant 0 : index
    %7 = vector.load %arg4[%c0_3, %c0_4] : memref<8x128xf32, #tpu.memory_space<vmem>>, vector<8x128xf32>
    tpu.vector_store %arg4[%c0_3, %c0_4], %6 {strides = array<i32>} : memref<8x128xf32, #tpu.memory_space<vmem>>, vector<8x128xf32>,
    return
  }
  func.func @transform_0(%arg0: i32) -> i32 {
    %c0_i32 = arith.constant 0 : i32
    %c0_i32_0 = arith.constant 0 : i32
    return %c0_i32 : i32
  }
  func.func @transform_1(%arg0: i32) -> i32 {
    %c0_i32 = arith.constant 0 : i32
    %c0_i32_0 = arith.constant 0 : i32
    return %c0_i32 : i32
  }
  func.func @transform_2(%arg0: i32) -> (i32, i32) {
    %c0_i32 = arith.constant 0 : i32
    %c0_i32_0 = arith.constant 0 : i32
    return %arg0, %c0_i32 : i32, i32
  }
  func.func @transform_3(%arg0: i32) -> (i32, i32) {
    %c0_i32 = arith.constant 0 : i32
    %c0_i32_0 = arith.constant 0 : i32
    return %arg0, %c0_i32 : i32, i32
  }
}

</mosaic_0001>

<bundles_post_ra>
// kernel: _lambda_.1
= control target key start
LH: loop header
LB: loop body
LE: loop exit
PB: predicated region body
PF: predicated region fallthrough
CT: control target
= control target key end

     0   :  { %10 = vsyncpa [#allocation5], 0  ;;  %s132_s0 = inlined_call_operand.<no memory space> [shape: f32[1], index: 0, kind: input, shape index: {}]   ;;  %s133_s1 = inlined_call_operand.<no memory space> [shape: f32[1], index: 1, kind: input, shape index: {}]   ;;  %s134_s2 = inlined_call_operand.hbm [shape: f32[8,128], index: 2, kind: input, shape index: {}]   ;;  %s135_s3 = inlined_call_operand.hbm [shape: f32[8,128], index: 3, kind: output, shape index: {}]  }
   0x1   :  { %11 = vsyncpa [#allocation6], 0  ;;  %s98_s12 = smov [#allocation4]  }
   0x2   :  { %s22_s13 = sshll.u32 %s98_s12, 4  ;;  %s23_s13 = int_to_ptr.vmem [resolvable:$true] %s22_s13 }
   0x3   :  { %s62_s14 = scalar_lea.vmem %s23_s13, 128  ;;  %p67_p1 = scmp.lt.s32.totalorder %s23_s13, %s23_s13 }
   0x4   :  { %p63_p0 = scmp.ne.s32.totalorder %s23_s13, %s62_s14  ;;  %p68_p2 = scmp.lt.s32.totalorder %s62_s14, %s62_s14 }
   0x6   :  { %p69_p3 = por %p68_p2, %p67_p1 }
   0x8   :  { %p70_p4 = pnand %p69_p3, %p63_p0 }
   0xa   :  { %73 = shalt.err (!%p70_p4)
}
   0xb   :  { %25 = dma.hbm_to_vmem [thread:$0]  %s134_s2, 128, %s23_s13, [#allocation5]  }
   0xc   :  { %94 = dma.done.wait [#allocation5], 128  }
   0xd   :  { %95 = vsyncadd [#allocation5], 4294967168  ;;  %v31_v0 = vstv %s132_s0  ;;  %v29_v1 = vld [vmem:[#allocation4] sm:$0xff]  ;;  %v34_v2 = vstv %s133_s1  ;;  %s99_s21 = smov [#allocation7]  }
   0xe   :  { %s43_s22 = sshll.u32 %s99_s21, 4  ;;  %v32_v3 = vmul.f32 %v31_v0, %v29_v1  ;;  %s44_s22 = int_to_ptr.vmem [resolvable:$true] %s43_s22 }
   0xf   :  { %s74_s23 = scalar_lea.vmem %s44_s22, 128  ;;  %p79_p6 = scmp.lt.s32.totalorder %s44_s22, %s44_s22 }
  0x10   :  { %v35_v4 = vadd.f32 %v34_v2, %v32_v3  ;;  %p75_p5 = scmp.ne.s32.totalorder %s44_s22, %s74_s23  ;;  %p80_p7 = scmp.lt.s32.totalorder %s74_s23, %s74_s23 }
  0x12   :  { %36 = vst [vmem:[#allocation7] sm:$0xff] %v35_v4  ;;  %p81_p8 = por %p80_p7, %p79_p6 }
  0x14   :  { %p82_p9 = pnand %p81_p8, %p75_p5 }
  0x16   :  { %85 = shalt.err (!%p82_p9)
}
  0x17   :  { %46 = dma.vmem_to_hbm [thread:$0]  %s44_s22, 128, %s135_s3, [#allocation6]  }
  0x18   :  { %96 = dma.done.wait [#allocation6], 128  }
  0x19   :  { %97 = vsyncadd [#allocation6], 4294967168 }
  0x1a   :  { %50 = vsyncpa [#allocation5], 1 }
  0x1b   :  { %51 = vsyncpa [#allocation6], 1 }

</bundles_post_ra>
